<compile_context>
chip_gen: v7x
topology: tpu7x:2x2x1
jax: 0.10.0
libtpu: 0.0.40
codegen_flags: <defaults>
</compile_context>

<pallas_src>
import jax
import jax.numpy as jnp
import numpy as np
from jax.experimental import pallas as pl
from jax.experimental.pallas import tpu as pltpu

BN_EPS = 1e-5  # nn.BatchNorm1d default eps


def _pick_tile(dim, max_tile, align):
    """Largest legal block size <= max_tile: the full dim (always legal) or an
    `align`-multiple divisor of dim."""
    if dim <= max_tile:
        return dim
    t = (max_tile // align) * align
    while t >= align:
        if dim % t == 0:
            return t
        t -= align
    return dim  # fallback: whole dim as a single block


# ----------------------------------------------------------------------------
# Stage 1: batch statistics (sum and sum-of-squares over the full batch).
# Gridded over row tiles; the (1, C) outputs act as resident accumulators.
# ----------------------------------------------------------------------------
def _bn_stats_kernel(x_ref, sum_ref, sumsq_ref):
    @pl.when(pl.program_id(0) == 0)
    def _():
        sum_ref[...] = jnp.zeros_like(sum_ref)
        sumsq_ref[...] = jnp.zeros_like(sumsq_ref)

    x = x_ref[...]
    sum_ref[...] += jnp.sum(x, axis=0, keepdims=True)
    sumsq_ref[...] += jnp.sum(x * x, axis=0, keepdims=True)


def _bn_batch_stats(x):
    n, c = x.shape
    tm = _pick_tile(n, 512, 8)
    return pl.pallas_call(
        _bn_stats_kernel,
        grid=(n // tm,),
        in_specs=[pl.BlockSpec((tm, c), lambda i: (i, 0))],
        out_specs=[pl.BlockSpec((1, c), lambda i: (0, 0)),
                   pl.BlockSpec((1, c), lambda i: (0, 0))],
        out_shape=[jax.ShapeDtypeStruct((1, c), jnp.float32),
                   jax.ShapeDtypeStruct((1, c), jnp.float32)],
        compiler_params=pltpu.CompilerParams(
            dimension_semantics=("arbitrary",)),
    )(x)


# ----------------------------------------------------------------------------
# Stage 2: fused scale/shift + ReLU + (pool-folded) Linear.
# ----------------------------------------------------------------------------
def _transition_main_kernel(x_ref, scale_ref, shift_ref, w_ref, b_ref, o_ref):
    # BN folded to a single FMA-shaped scale/shift, then ReLU.
    y = jnp.maximum(x_ref[...] * scale_ref[...] + shift_ref[...], 0.0)
    # MXU matmul against the pool-folded weight (f32 accumulation).
    y = y.astype(w_ref.dtype)
    o_ref[...] = (
        jnp.dot(y, w_ref[...], preferred_element_type=jnp.float32) + b_ref[...]
    ).astype(o_ref.dtype)


def transition_block(x, gamma, beta, w, b, drop_rate=0.0,
                     matmul_dtype=jnp.float32):
    """x: (N, input_dim) f32; w: (output_dim, input_dim); b: (output_dim,)."""
    # TODO(synk): dropout for drop_rate > 0 (training-time RNG masking) not
    # implemented; the module default drop_rate=0.0 makes it a no-op.
    n, c = x.shape
    out_dim = w.shape[0]
    assert out_dim % 2 == 0, "avg_pool1d(kernel=2) needs even output_dim"
    out_half = out_dim // 2

    x = jnp.asarray(x, jnp.float32)
    w = jnp.asarray(w, jnp.float32)
    b = jnp.asarray(b, jnp.float32)
    gamma = jnp.asarray(gamma, jnp.float32)
    beta = jnp.asarray(beta, jnp.float32)

    # Fold avg_pool1d(kernel=2) into the Linear (exact: both are linear maps
    # and ReLU happens before them).
    w_pooled_t = (0.5 * (w[0::2, :] + w[1::2, :])).T.astype(matmul_dtype)  # (C, out_half)
    b_pooled = (0.5 * (b[0::2] + b[1::2])).reshape(1, out_half)

    # --- stage 1: full-batch BN stats, then fold affine into scale/shift ---
    s, ssq = _bn_batch_stats(x)
    mean = s / n
    var = jnp.maximum(ssq / n - mean * mean, 0.0)      # biased var, clamped
    scale = gamma.reshape(1, c) * jax.lax.rsqrt(var + BN_EPS)
    shift = beta.reshape(1, c) - mean * scale

    # --- stage 2: gridded normalize + ReLU + pooled matmul ---
    tm = _pick_tile(n, 256, 8)          # row tile
    tn = _pick_tile(out_half, 256, 128)  # output-lane tile
    grid = (n // tm, out_half // tn)

    cost = pl.CostEstimate(
        flops=2 * n * c * out_half + 3 * n * c,
        transcendentals=0,
        bytes_accessed=4 * (n * c + c * out_half + out_half + 2 * c
                            + n * out_half),
    )

    return pl.pallas_call(
        _transition_main_kernel,
        grid=grid,
        in_specs=[
            pl.BlockSpec((tm, c), lambda i, j: (i, 0)),      # x row tile
            pl.BlockSpec((1, c), lambda i, j: (0, 0)),       # scale (resident)
            pl.BlockSpec((1, c), lambda i, j: (0, 0)),       # shift (resident)
            pl.BlockSpec((c, tn), lambda i, j: (0, j)),      # W_pooled^T col tile
            pl.BlockSpec((1, tn), lambda i, j: (0, j)),      # b_pooled col tile
        ],
        out_specs=pl.BlockSpec((tm, tn), lambda i, j: (i, j)),
        out_shape=jax.ShapeDtypeStruct((n, out_half), jnp.float32),
        compiler_params=pltpu.CompilerParams(
            dimension_semantics=("parallel", "parallel"),
            vmem_limit_bytes=32 * 1024 * 1024),
        cost_estimate=cost,
    )(x, scale, shift, w_pooled_t, b_pooled)


def _reference(x, gamma, beta, w, b):
    """Pure-JAX reference mirroring the PyTorch forward (training-mode BN)."""
    mean = jnp.mean(x, axis=0, keepdims=True)
    var = jnp.mean((x - mean) ** 2, axis=0, keepdims=True)
    y = (x - mean) / jnp.sqrt(var + BN_EPS) * gamma.reshape(1, -1) + beta.reshape(1, -1)
    y = jnp.maximum(y, 0.0)
    z = y @ w.T + b
    n, d = z.shape
    return z.reshape(n, d // 2, 2).mean(-1)


if __name__ == "__main__":
    N, IN_DIM, OUT_DIM = 8, 32, 64

    key = jax.random.PRNGKey(0)
    kx, kw, kb, kg, kbe = jax.random.split(key, 5)

    x = jax.random.normal(kx, (N, IN_DIM), dtype=jnp.float32)

    bound = 1.0 / np.sqrt(IN_DIM)
    w = jax.random.uniform(kw, (OUT_DIM, IN_DIM), jnp.float32, -bound, bound)
    b = jax.random.uniform(kb, (OUT_DIM,), jnp.float32, -bound, bound)
    gamma = 1.0 + 0.1 * jax.random.normal(kg, (IN_DIM,), dtype=jnp.float32)
    beta = 0.1 * jax.random.normal(kbe, (IN_DIM,), dtype=jnp.float32)

    out = transition_block(x, gamma, beta, w, b)
    out = jax.block_until_ready(out)

    ref = _reference(x, gamma, beta, w, b)
    np.testing.assert_allclose(np.asarray(out), np.asarray(ref), rtol=1e-3, atol=1e-3)
    assert out.shape == (N, OUT_DIM // 2)

    print("KERNEL_OK")
</pallas_src>

<mosaic_0001>
module attributes {stable_mosaic.version = 11 : i64} {
  func.func @_bn_stats_kernel(%arg0: i32, %arg1: memref<8x32xf32, #tpu.memory_space<vmem>>, %arg2: memref<1x32xf32, #tpu.memory_space<vmem>>, %arg3: memref<1x32xf32, #tpu.memory_space<vmem>>) attributes {dimension_semantics = [#tpu.dimension_semantics<arbitrary>], iteration_bounds = array<i64: 1>, scalar_prefetch = 0 : i64, scratch_operands = 0 : i64, tpu.core_type = #tpu.core_type<tc>, window_params = [{transform_indices = @transform_0, window_bounds = array<i64: 8, 32>}, {pipeline_mode = #tpu.pipeline_mode<synchronous>, transform_indices = @transform_1, window_bounds = array<i64: 1, 32>}, {pipeline_mode = #tpu.pipeline_mode<synchronous>, transform_indices = @transform_2, window_bounds = array<i64: 1, 32>}]} {
    %c0_i32 = arith.constant 0 : i32
    %0 = arith.cmpi eq, %arg0, %c0_i32 : i32
    %1 = arith.extui %0 : i1 to i32
    %c0_i32_0 = arith.constant 0 : i32
    %2 = arith.cmpi ne, %1, %c0_i32_0 : i32
    scf.if %2 {
      %cst_11 = arith.constant 0.000000e+00 : f32
      %15 = vector.broadcast %cst_11 : f32 to vector<1x32xf32>
      %c0_12 = arith.constant 0 : index
      %c0_13 = arith.constant 0 : index
      %16 = vector.load %arg2[%c0_12, %c0_13] : memref<1x32xf32, #tpu.memory_space<vmem>>, vector<1x32xf32>
      tpu.vector_store %arg2[%c0_12, %c0_13], %15 {strides = array<i32>} : memref<1x32xf32, #tpu.memory_space<vmem>>, vector<1x32xf32>,
      %cst_14 = arith.constant 0.000000e+00 : f32
      %17 = vector.broadcast %cst_14 : f32 to vector<1x32xf32>
      %c0_15 = arith.constant 0 : index
      %c0_16 = arith.constant 0 : index
      %18 = vector.load %arg3[%c0_15, %c0_16] : memref<1x32xf32, #tpu.memory_space<vmem>>, vector<1x32xf32>
      tpu.vector_store %arg3[%c0_15, %c0_16], %17 {strides = array<i32>} : memref<1x32xf32, #tpu.memory_space<vmem>>, vector<1x32xf32>,
    } else {
    }
    %c0 = arith.constant 0 : index
    %c0_1 = arith.constant 0 : index
    %3 = vector.load %arg1[%c0, %c0_1] : memref<8x32xf32, #tpu.memory_space<vmem>>, vector<8x32xf32>
    %c0_2 = arith.constant 0 : index
    %c0_3 = arith.constant 0 : index
    %4 = vector.load %arg2[%c0_2, %c0_3] : memref<1x32xf32, #tpu.memory_space<vmem>>, vector<1x32xf32>
    %cst = arith.constant dense<0.000000e+00> : vector<32xf32>
    %5 = vector.multi_reduction <add>, %3, %cst [0] : vector<8x32xf32> to vector<32xf32>
    %6 = vector.shape_cast %5 : vector<32xf32> to vector<1x32xf32>
    %7 = arith.addf %4, %6 : vector<1x32xf32>
    %c0_4 = arith.constant 0 : index
    %c0_5 = arith.constant 0 : index
    %8 = vector.load %arg2[%c0_4, %c0_5] : memref<1x32xf32, #tpu.memory_space<vmem>>, vector<1x32xf32>
    tpu.vector_store %arg2[%c0_4, %c0_5], %7 {strides = array<i32>} : memref<1x32xf32, #tpu.memory_space<vmem>>, vector<1x32xf32>,
    %c0_6 = arith.constant 0 : index
    %c0_7 = arith.constant 0 : index
    %9 = vector.load %arg3[%c0_6, %c0_7] : memref<1x32xf32, #tpu.memory_space<vmem>>, vector<1x32xf32>
    %10 = arith.mulf %3, %3 : vector<8x32xf32>
    %cst_8 = arith.constant dense<0.000000e+00> : vector<32xf32>
    %11 = vector.multi_reduction <add>, %10, %cst_8 [0] : vector<8x32xf32> to vector<32xf32>
    %12 = vector.shape_cast %11 : vector<32xf32> to vector<1x32xf32>
    %13 = arith.addf %9, %12 : vector<1x32xf32>
    %c0_9 = arith.constant 0 : index
    %c0_10 = arith.constant 0 : index
    %14 = vector.load %arg3[%c0_9, %c0_10] : memref<1x32xf32, #tpu.memory_space<vmem>>, vector<1x32xf32>
    tpu.vector_store %arg3[%c0_9, %c0_10], %13 {strides = array<i32>} : memref<1x32xf32, #tpu.memory_space<vmem>>, vector<1x32xf32>,
    return
  }
  func.func @transform_0(%arg0: i32) -> (i32, i32) {
    %c0_i32 = arith.constant 0 : i32
    %c0_i32_0 = arith.constant 0 : i32
    return %arg0, %c0_i32 : i32, i32
  }
  func.func @transform_1(%arg0: i32) -> (i32, i32) {
    %c0_i32 = arith.constant 0 : i32
    %c0_i32_0 = arith.constant 0 : i32
    %c0_i32_1 = arith.constant 0 : i32
    return %c0_i32, %c0_i32_0 : i32, i32
  }
  func.func @transform_2(%arg0: i32) -> (i32, i32) {
    %c0_i32 = arith.constant 0 : i32
    %c0_i32_0 = arith.constant 0 : i32
    %c0_i32_1 = arith.constant 0 : i32
    return %c0_i32, %c0_i32_0 : i32, i32
  }
}

</mosaic_0001>

<bundles_post_ra>
// kernel: tpu_custom_call.1
= control target key start
LH: loop header
LB: loop body
LE: loop exit
PB: predicated region body
PF: predicated region fallthrough
CT: control target
= control target key end

     0   :  { %8 = vsyncpa [#allocation3], 0  ;;  %s227_s0 = inlined_call_operand.hbm [shape: f32[8,32], index: 0, kind: input, shape index: {}]   ;;  %s228_s1 = inlined_call_operand.hbm [shape: f32[1,32], index: 1, kind: output, shape index: {0}]   ;;  %s229_s2 = inlined_call_operand.hbm [shape: f32[1,32], index: 2, kind: output, shape index: {1}]  }
   0x1   :  { %9 = vsyncpa [#allocation4], 0 }
   0x2   :  { %10 = vsyncpa [#allocation7], 0  ;;  %s160_s9 = smov [#allocation2]   ;;  %s88_s13 = scalar_lea.hbm %s227_s0, 128 }
   0x3   :  { %s17_s10 = sshll.u32 %s160_s9, 4  ;;  %p89_p0 = scmp.ne.s32.totalorder %s227_s0, %s88_s13  ;;  %s18_s10 = int_to_ptr.vmem [resolvable:$true] %s17_s10 }
   0x4   :  { %p92_p1 = scmp.lt.u32.totalorder %s88_s13, %s227_s0 }
   0x6   :  { %p94_p2 = pnand %p92_p1, %p89_p0 }
   0x8   :  { %97 = shalt.err (!%p94_p2)
}
   0x9   :  { %s98_s18 = scalar_lea.vmem %s18_s10, 128  ;;  %p103_p4 = scmp.lt.s32.totalorder %s18_s10, %s18_s10 }
   0xa   :  { %p99_p3 = scmp.ne.s32.totalorder %s18_s10, %s98_s18  ;;  %p104_p5 = scmp.lt.s32.totalorder %s98_s18, %s98_s18 }
   0xc   :  { %p105_p6 = por %p104_p5, %p103_p4 }
   0xe   :  { %p106_p7 = pnand %p105_p6, %p99_p3 }
  0x10   :  { %109 = shalt.err (!%p106_p7)
}
  0x11   :  { %20 = dma.hbm_to_vmem [thread:$0]  %s227_s0, 128, %s18_s10, [#allocation3]  }
  0x12   :  { %154 = dma.done.wait [#allocation3], 128  }
  0x13   :  { %155 = vsyncadd [#allocation3], 4294967168  ;;  %vm28_vm0 = vcmask 253952   ;;  %v161_v0 = vmov 0.0   ;;  %vm33_vm1 = vcmask 261120   ;;  %v31_v1 = vld [vmem:[#allocation2] sm:$0xff] }
  0x14   :  { %29 = vst.msk [vmem:[#allocation5] sm:$0x1] %vm28_vm0, %v161_v0  ;;  %30 = vst.msk [vmem:[#allocation6] sm:$0x1] %vm28_vm0, %v161_v0  ;;  %v34_v2 = vsel %vm33_vm1, %v31_v1, 0.0  ;;  %v45_v3 = vmul.f32 %v31_v1, %v31_v1  ;;  %s162_s0 = smov [#allocation5]  }
  0x15   :  { %v35_v4 = vrot.slane %v34_v2, 4  ;;  %s61_s21 = sshll.u32 %s162_s0, 4  ;;  %s163_s22 = smov [#allocation6]   ;;  %s62_s21 = int_to_ptr.vmem [resolvable:$true] %s61_s21 }
  0x16   :  { %v46_v5 = vsel %vm33_vm1, %v45_v3, 0.0  ;;  %s71_s23 = sshll.u32 %s163_s22, 4  ;;  %s110_s24 = scalar_lea.vmem %s62_s21, 16  ;;  %s194_s23 = int_to_ptr.vmem [resolvable:$true] %s71_s23 }
  0x17   :  { %v36_v6 = vadd.f32 %v35_v4, %v34_v2  ;;  %v47_v7 = vrot.slane %v46_v5, 4  ;;  %p111_p8 = scmp.ne.s32.totalorder %s62_s21, %s110_s24  ;;  %s114_s25 = scalar_lea.vmem %s62_s21, 32 }
  0x18   :  { %p115_p9 = scmp.lt.s32.totalorder %s62_s21, %s62_s21  ;;  %p116_p10 = scmp.lt.s32.totalorder %s114_s25, %s110_s24 }
  0x19   :  { %v37_v8 = vrot.slane %v36_v6, 2  ;;  %v48_v9 = vadd.f32 %v47_v7, %v46_v5 }
  0x1a   :  { %p117_p11 = por %p116_p10, %p115_p9 }
  0x1b   :  { %v38_v10 = vadd.f32 %v37_v8, %v36_v6  ;;  %v49_v11 = vrot.slane %v48_v9, 2  ;;  %v32_v14 = vld [vmem:[#allocation5] sm:$0x1]  ;;  %v44_v17 = vld [vmem:[#allocation6] sm:$0x1] }
  0x1c   :  { %p118_p12 = pnand %p117_p11, %p111_p8 }
  0x1d   :  { %v39_v12 = vrot.slane %v38_v10, 1  ;;  %v50_v13 = vadd.f32 %v49_v11, %v48_v9 }
  0x1f   :  { %v40_v15 = vadd.f32 %v39_v12, %v38_v10  ;;  %v51_v16 = vrot.slane %v50_v13, 1 }
  0x21   :  { %v41_v18 = vadd.f32 %v40_v15, %v32_v14  ;;  %v52_v19 = vadd.f32 %v51_v16, %v50_v13 }
  0x23   :  { %43 = vst.msk [vmem:[#allocation5] sm:$0x1] %vm28_vm0, %v41_v18  ;;  %v53_v20 = vadd.f32 %v52_v19, %v44_v17 }
  0x24   :  { %121 = shalt.err (!%p118_p12)
}
  0x25   :  { %s122_s28 = scalar_lea.hbm %s228_s1, 16 }
  0x26   :  { %p123_p13 = scmp.ne.s32.totalorder %s228_s1, %s122_s28  ;;  %p126_p0 = scmp.lt.u32.totalorder %s122_s28, %s228_s1 }
  0x28   :  { %p128_p1 = pnand %p126_p0, %p123_p13 }
  0x2a   :  { %131 = shalt.err (!%p128_p1)
}
  0x2b   :  { %64 = dma.vmem_to_hbm [thread:$0]  %s62_s21, 16, %s228_s1, [#allocation4]   ;;  %54 = vst.msk [vmem:[#allocation6] sm:$0x1] %vm28_vm0, %v53_v20 }
  0x2c   :  { %s132_s7 = scalar_lea.vmem %s194_s23, 16  ;;  %s136_s8 = scalar_lea.vmem %s194_s23, 32 }
  0x2d   :  { %p133_p2 = scmp.ne.s32.totalorder %s194_s23, %s132_s7  ;;  %p137_p3 = scmp.lt.s32.totalorder %s194_s23, %s194_s23 }
  0x2e   :  { %p138_p4 = scmp.lt.s32.totalorder %s136_s8, %s132_s7 }
  0x30   :  { %p139_p5 = por %p138_p4, %p137_p3 }
  0x32   :  { %p140_p6 = pnand %p139_p5, %p133_p2 }
  0x34   :  { %143 = shalt.err (!%p140_p6)
}
  0x35   :  { %s144_s11 = scalar_lea.hbm %s229_s2, 16 }
  0x36   :  { %p145_p7 = scmp.ne.s32.totalorder %s229_s2, %s144_s11  ;;  %p148_p8 = scmp.lt.u32.totalorder %s144_s11, %s229_s2 }
  0x38   :  { %p150_p9 = pnand %p148_p8, %p145_p7 }
  0x3a   :  { %153 = shalt.err (!%p150_p9)
}
  0x3b   :  { %74 = dma.vmem_to_hbm [thread:$0]  %s194_s23, 16, %s229_s2, [#allocation7]  }
  0x3c   :  { %156 = dma.done.wait [#allocation4], 16  }
  0x3d   :  { %157 = vsyncadd [#allocation4], 4294967280 }
  0x3e   :  { %158 = dma.done.wait [#allocation7], 16  }
  0x3f   :  { %159 = vsyncadd [#allocation7], 4294967280 }
  0x40   :  { %81 = vsyncpa [#allocation3], 1 }
  0x41   :  { %82 = vsyncpa [#allocation4], 1 }
  0x42   :  { %83 = vsyncpa [#allocation7], 1 }

</bundles_post_ra>
